<compile_context>
chip_gen: v6e
topology: v6e:2x2x1
jax: 0.10.0
libtpu: 0.0.40
codegen_flags: <defaults>
</compile_context>

<pallas_src>
import jax
import jax.numpy as jnp
from jax.experimental import pallas as pl
from jax.experimental.pallas import tpu as pltpu


def mtl_loss_kernel(x_ref, out_ref):
    # x_ref:  (1, 4) f32 VMEM tile packed as [w0, w1, l1, l2].
    # out_ref: (1, 1) f32 SMEM scalar output.
    x = x_ref[...]                      # (1, 4)
    w0 = x[:, 0:1]
    w1 = x[:, 1:2]
    l1 = x[:, 2:3]
    l2 = x[:, 3:4]

    # Numerically-stable 2-way softmax on (1, 1) slices (no cross-lane reduce).
    m = jnp.maximum(w0, w1)
    e0 = jnp.exp(w0 - m)
    e1 = jnp.exp(w1 - m)
    inv_s = 1.0 / (e0 + e1)
    p0 = e0 * inv_s                     # softmax prob 0
    p1 = e1 * inv_s                     # softmax prob 1

    total = p0 * l1 + p1 * l2 + 0.001 / (p0 * p1)   # (1, 1), sum(w*l) + 0.001/prod(w)

    # Single-element reduction -> scalar store straight into SMEM.
    out_ref[0, 0] = jnp.sum(total)


@jax.jit
def mtl_loss(w_param, l1, l2):
    """w_param: (2,) f32 raw weights; l1, l2: scalar f32 losses."""
    # One packed (1, 4) operand: [w0, w1, l1, l2]. A single concatenate so the
    # wrapper-side layout plumbing fuses into one op under jit.
    packed = jnp.concatenate(
        [w_param.astype(jnp.float32).reshape(-1),
         jnp.stack([l1, l2]).astype(jnp.float32)]
    ).reshape(1, 4)

    out = pl.pallas_call(
        mtl_loss_kernel,
        out_shape=jax.ShapeDtypeStruct((1, 1), jnp.float32),
        in_specs=[pl.BlockSpec((1, 4), lambda: (0, 0))],
        out_specs=pl.BlockSpec(memory_space=pltpu.MemorySpace.SMEM),
    )(packed)
    return out[0, 0]


def mtl_loss_ref(w_param, l1, l2):
    w = jax.nn.softmax(w_param.astype(jnp.float32))
    l = jnp.stack([l1, l2]).astype(jnp.float32)
    return jnp.sum(w * l) + 0.001 / jnp.prod(w)


if __name__ == "__main__":
    # Deterministic parameter init, matching nn.Parameter(torch.tensor([1, 1], float32)).
    w_param = jnp.array([1.0, 1.0], dtype=jnp.float32)

    # Small deterministic scalar losses (what forward(l1, l2) expects).
    key = jax.random.PRNGKey(0)
    k1, k2 = jax.random.split(key)
    l1 = jax.random.uniform(k1, (), dtype=jnp.float32) * 2.0
    l2 = jax.random.uniform(k2, (), dtype=jnp.float32) * 2.0

    out = mtl_loss(w_param, l1, l2)
    out = jax.block_until_ready(out)

    ref = mtl_loss_ref(w_param, l1, l2)
    assert jnp.allclose(out, ref, rtol=1e-5, atol=1e-5), (out, ref)

    print("KERNEL_OK")
</pallas_src>

<mosaic_0001>
module attributes {stable_mosaic.version = 11 : i64} {
  func.func @mtl_loss_kernel(%arg0: memref<1x4xf32, #tpu.memory_space<vmem>>, %arg1: memref<1x1xf32, #tpu.memory_space<smem>>) attributes {dimension_semantics = [], scalar_prefetch = 0 : i64, scratch_operands = 0 : i64, tpu.core_type = #tpu.core_type<tc>} {
    %c0 = arith.constant 0 : index
    %c0_0 = arith.constant 0 : index
    %0 = vector.load %arg0[%c0, %c0_0] : memref<1x4xf32, #tpu.memory_space<vmem>>, vector<1x4xf32>
    %1 = vector.extract_strided_slice %0 {offsets = [0, 0], sizes = [1, 1], strides = [1, 1]} : vector<1x4xf32> to vector<1x1xf32>
    %2 = vector.extract_strided_slice %0 {offsets = [0, 1], sizes = [1, 1], strides = [1, 1]} : vector<1x4xf32> to vector<1x1xf32>
    %3 = vector.extract_strided_slice %0 {offsets = [0, 2], sizes = [1, 1], strides = [1, 1]} : vector<1x4xf32> to vector<1x1xf32>
    %4 = vector.extract_strided_slice %0 {offsets = [0, 3], sizes = [1, 1], strides = [1, 1]} : vector<1x4xf32> to vector<1x1xf32>
    %5 = arith.maximumf %1, %2 : vector<1x1xf32>
    %6 = arith.subf %1, %5 : vector<1x1xf32>
    %7 = math.exp %6 : vector<1x1xf32>
    %8 = arith.subf %2, %5 : vector<1x1xf32>
    %9 = math.exp %8 : vector<1x1xf32>
    %10 = arith.addf %7, %9 : vector<1x1xf32>
    %cst = arith.constant 1.000000e+00 : f32
    %11 = vector.broadcast %cst : f32 to vector<1x1xf32>
    %12 = arith.divf %11, %10 : vector<1x1xf32>
    %13 = arith.mulf %7, %12 : vector<1x1xf32>
    %14 = arith.mulf %9, %12 : vector<1x1xf32>
    %15 = arith.mulf %13, %3 : vector<1x1xf32>
    %16 = arith.mulf %14, %4 : vector<1x1xf32>
    %17 = arith.addf %15, %16 : vector<1x1xf32>
    %18 = arith.mulf %13, %14 : vector<1x1xf32>
    %cst_1 = arith.constant 1.000000e-03 : f32
    %19 = vector.broadcast %cst_1 : f32 to vector<1x1xf32>
    %20 = arith.divf %19, %18 : vector<1x1xf32>
    %21 = arith.addf %17, %20 : vector<1x1xf32>
    %22 = vector.shape_cast %21 : vector<1x1xf32> to vector<1x1x1xf32>
    %cst_2 = arith.constant dense<0.000000e+00> : vector<1xf32>
    %23 = vector.multi_reduction <add>, %22, %cst_2 [1, 2] : vector<1x1x1xf32> to vector<1xf32>
    %24 = vector.shape_cast %23 : vector<1xf32> to vector<1x1x1xf32>
    %25 = vector.extract %24[0, 0, 0] : f32 from vector<1x1x1xf32>
    %c0_3 = arith.constant 0 : index
    %c0_4 = arith.constant 0 : index
    %26 = memref.load %arg1[%c0_3, %c0_4] : memref<1x1xf32, #tpu.memory_space<smem>>
    memref.store %25, %arg1[%c0_3, %c0_4] : memref<1x1xf32, #tpu.memory_space<smem>>
    return
  }
}

</mosaic_0001>

<bundles_post_ra>
// kernel: mtl_loss.1
= control target key start
LH: loop header
LB: loop body
LE: loop exit
PB: predicated region body
PF: predicated region fallthrough
CT: control target
= control target key end

     0   :  { %s117_s0 = inlined_call_operand.vmem [shape: f32[1,4], index: 0, kind: input, shape index: {}]   ;;  %s118_s1 = inlined_call_operand.hbm [shape: f32[1,1], index: 1, kind: output, shape index: {}]  }
   0x1   :  { %v9_v0 = vld [vmem:[%s117_s0] sm:$0x1] }
   0x2   :  { %6 = vsyncpa [#allocation3], 0  ;;  %s97_s8 = smov 127   ;;  %s98_s9 = smov 1  }
   0x3   :  { %11 = vrot.lane.b32.xlu0 %v9_v0, %s97_s8  ;;  %s99_s10 = smov 126   ;;  %s100_s11 = smov [#allocation2]  }
  0x75   :  { %v12_v1 = vpop.permute.xlu0 %11 }
  0x76   :  { %v14_v2 = vmax.f32 %v9_v0, %v12_v1 }
  0x78   :  { %19 = vrot.lane.b32.xlu0 %v14_v2, %s98_s9  ;;  %v15_v7 = vsub.f32 %v9_v0, %v14_v2 }
  0x7a   :  { %v16_v8 = vmul.f32 1.442695, %v15_v7 }
  0x7c   :  { %38 = vrot.lane.b32.xlu0 %v9_v0, %s99_s10 }
  0xea   :  { %v20_v3 = vpop.permute.xlu0 %19 }
  0xeb   :  { %v22_v4 = vsub.f32 %v9_v0, %v20_v3 }
  0xed   :  { %v23_v5 = vmul.f32 1.442695, %v22_v4 }
  0xee   :  { %v39_v16 = vpop.permute.xlu0 %38 }
  0xef   :  { %79 = vpow2.f32 %v23_v5 }
  0xf0   :  { %81 = vpow2.f32 %v16_v8 }
  0xfc   :  { %v80_v6 = vpop.eup %79 }
  0xfd   :  { %26 = vrot.lane.b32.xlu1 %v80_v6, %s97_s8  ;;  %v82_v9 = vpop.eup %81 }
 0x16f   :  { %v27_v10 = vpop.permute.xlu1 %26 }
 0x170   :  { %v29_v11 = vadd.f32 %v82_v9, %v27_v10 }
 0x172   :  { %83 = vrcp.f32 %v29_v11 }
 0x17f   :  { %v84_v12 = vpop.eup %83 }
 0x180   :  { %34 = vrot.lane.b32.xlu1 %v84_v12, %s98_s9  ;;  %v32_v13 = vmul.f32 %v84_v12, %v82_v9 }
 0x182   :  { %v41_v21 = vmul.f32 %v39_v16, %v32_v13 }
 0x1f2   :  { %v35_v14 = vpop.permute.xlu1 %34 }
 0x1f3   :  { %v37_v15 = vmul.f32 %v80_v6, %v35_v14 }
 0x1f5   :  { %v42_v17 = vmul.f32 %v39_v16, %v37_v15  ;;  %49 = vrot.lane.b32.xlu1 %v37_v15, %s97_s8 }
 0x1f7   :  { %44 = vrot.lane.b32.xlu0 %v42_v17, %s97_s8 }
 0x267   :  { %v50_v18 = vpop.permute.xlu1 %49 }
 0x268   :  { %v52_v19 = vmul.f32 %v50_v18, %v32_v13 }
 0x269   :  { %v45_v20 = vpop.permute.xlu0 %44 }
 0x26a   :  { %85 = vrcp.f32 %v52_v19  ;;  %v47_v23 = vadd.f32 %v45_v20, %v41_v21 }
 0x277   :  { %v86_v22 = vpop.eup %85 }
 0x278   :  { %v54_v24 = vmul.f32 0.001, %v86_v22 }
 0x27a   :  { %v55_v25 = vadd.f32 %v54_v24, %v47_v23 }
 0x27c   :  { %73 = vpush %v55_v25 }
 0x2ad   :  { %s74_s0 = spop %73 }
 0x2ae   :  { %59 = sst [smem:[#allocation2]] %s74_s0 }
 0x2af   :  { %67 = dma.smem_to_hbm %s100_s11, 16, %s118_s1, [#allocation3]  }
 0x2b0   :  { %95 = dma.done.wait [#allocation3], 16  }
 0x2b1   :  { %96 = vsyncadd [#allocation3], 4294967280 }
 0x2b2   :  { %71 = sfence }
 0x2b3   :  { %72 = vsyncpa [#allocation3], 1 }

</bundles_post_ra>
